<compile_context>
chip_gen: v7x
topology: tpu7x:2x2x1
jax: 0.10.0
libtpu: 0.0.40
codegen_flags: <defaults>
</compile_context>

<pallas_src>
import jax
import jax.numpy as jnp
from jax import lax
from jax.experimental import pallas as pl
from jax.experimental.pallas import tpu as pltpu

K = 5      # conv kernel size
PAD = 2    # conv padding (length-preserving)


# -----------------------------------------------------------------------------
# Single fused kernel: conv1+ReLU -> conv2+ReLU -> conv3+ReLU for TB batch elems
# -----------------------------------------------------------------------------
def _denoiser_kernel(xp_ref, w1_ref, b1_ref, w2_ref, b2_ref, w3_ref, b3_ref,
                     o_ref, h1p_ref, h2p_ref):
    # xp_ref : (TB, L+2*PAD, 1)   pre-padded input signals (TB batch elements)
    # w1_ref : (K, C)      f32    w1[k, c]       = torch_w1[c, 0, k]
    # b1_ref : (1, C)      f32
    # w2_ref : (K*C, C)    bf16   w2[k*C + i, o] = torch_w2[o, i, k]
    # b2_ref : (1, C)      f32
    # w3_ref : (K, C)      f32    w3[k, i]       = torch_w3[0, i, k]
    # b3_ref : (1, 1)      f32
    # o_ref  : (1, TB, L)  f32    lane-dense output tile (L on the lane axis)
    # h1p_ref, h2p_ref : (TB, L+2*PAD, C) f32 VMEM scratch (padded activations)
    TB, Lp, _ = xp_ref.shape
    L = o_ref.shape[2]
    C = w1_ref.shape[1]

    # Zero only the PAD rows of the scratch (the interior is fully overwritten
    # below).  Done every step so it stays correct when the "parallel" grid
    # axis is split across TensorCores; the cost is a few tiny stores.
    zpad = jnp.zeros((TB, PAD, C), jnp.float32)
    h1p_ref[:, :PAD, :] = zpad
    h1p_ref[:, PAD + L:, :] = zpad
    h2p_ref[:, :PAD, :] = zpad
    h2p_ref[:, PAD + L:, :] = zpad

    # ---- conv1 (Cin = 1) + ReLU: VPU broadcast-MAC --------------------------
    # One hoisted lane broadcast; the k loop uses sublane window slices of it.
    xb = jnp.broadcast_to(xp_ref[...], (TB, Lp, C))            # (TB, Lp, C)
    w1 = w1_ref[...]                                           # (K, C)
    acc1 = xb[:, 0:L, :] * w1[0]
    for k in range(1, K):
        acc1 = acc1 + xb[:, k:k + L, :] * w1[k]
    h1p_ref[:, PAD:PAD + L, :] = jnp.maximum(acc1 + b1_ref[...], 0.0)

    # ---- conv2 (C -> C) + ReLU: single im2col MXU matmul ---------------------
    # (TB*L, K*C) @ (K*C, C); bf16 operands, f32 accumulation.
    h1p = h1p_ref[...]                                         # (TB, Lp, C)
    cols = jnp.concatenate([h1p[:, k:k + L, :] for k in range(K)], axis=-1)
    cols = cols.reshape(TB * L, K * C).astype(jnp.bfloat16)
    h2 = jnp.dot(cols, w2_ref[...], preferred_element_type=jnp.float32)
    h2 = jnp.maximum(h2 + b2_ref[...], 0.0)                    # (TB*L, C)
    h2p_ref[:, PAD:PAD + L, :] = h2.reshape(TB, L, C)

    # ---- conv3 (Cout = 1) + ReLU: VPU MAC, ONE cross-lane reduce -------------
    h2p = h2p_ref[...]                                         # (TB, Lp, C)
    w3 = w3_ref[...]                                           # (K, C)
    prod = h2p[:, 0:L, :] * w3[0]
    for k in range(1, K):
        prod = prod + h2p[:, k:k + L, :] * w3[k]
    y = jnp.sum(prod, axis=-1) + b3_ref[...]                   # (TB, L), lane-dense
    o_ref[0] = jnp.maximum(y, 0.0)                             # fused ReLU


# -----------------------------------------------------------------------------
# Wrapper: layout prep + one pallas_call for the whole network.
# -----------------------------------------------------------------------------
def _choose_batch_tile(B, L):
    """Pick TB so M = TB*L fills the MXU (~512 rows), but keep >= 2 grid steps
    when B >= 2 so both v7x TensorCores get work under 'parallel' semantics."""
    tb = max(1, min(B, 512 // max(L, 1)))
    if B >= 2:
        tb = min(tb, (B + 1) // 2)
    return tb


def conv_denoiser_forward(params, x, *, batch_tile=None):
    """ConvDenoiser forward.  x: (B, 1, L) -> (B, 1, L)."""
    w1, b1 = params["conv1"]          # (C, 1, K), (C,)
    w2, b2 = params["conv2"]          # (C, C, K), (C,)
    w3, b3 = params["conv3"]          # (1, C, K), (1,)
    B, cin, L = x.shape
    assert cin == 1
    C = w1.shape[0]
    Lp = L + 2 * PAD

    tb = batch_tile if batch_tile is not None else _choose_batch_tile(B, L)
    n_steps = -(-B // tb)             # cdiv
    b_pad = n_steps * tb

    # (B, 1, L) -> (B, L, 1); pad the length axis once (so conv windows are
    # static slices) and pad the batch up to a multiple of the batch tile.
    x_l1 = jnp.transpose(x, (0, 2, 1)).astype(jnp.float32)            # (B, L, 1)
    x_pad = jnp.pad(x_l1, ((0, b_pad - B), (PAD, PAD), (0, 0)))       # (b_pad,Lp,1)

    # Weight layouts the kernel expects.
    w1_kc = jnp.transpose(w1[:, 0, :], (1, 0)).astype(jnp.float32)    # (K, C)
    w2_flat = (jnp.transpose(w2, (2, 1, 0))                           # (K,Cin,Cout)
               .reshape(K * C, C).astype(jnp.bfloat16))               # (K*C, C)
    w3_kc = jnp.transpose(w3[0], (1, 0)).astype(jnp.float32)          # (K, C)
    b1r = b1.reshape(1, C).astype(jnp.float32)
    b2r = b2.reshape(1, C).astype(jnp.float32)
    b3r = b3.reshape(1, 1).astype(jnp.float32)

    # VMEM budget hint: double-buffered blocks + scratch + transients, with
    # headroom, clamped to the v7x physical 64 MiB budget.
    act = tb * Lp * C * 4
    est = (2 * tb * Lp * 4 + 2 * tb * L * 4
           + 2 * (K * C * C * 2 + 2 * K * C * 4 + (2 * C + 1) * 4)
           + 2 * act + 6 * act
           + tb * L * K * C * (4 + 2))
    vmem_limit = int(min(64 * 1024 * 1024, max(16 * 1024 * 1024, 2 * est)))

    out = pl.pallas_call(
        _denoiser_kernel,
        out_shape=jax.ShapeDtypeStruct((n_steps, tb, L), jnp.float32),
        grid=(n_steps,),
        in_specs=[
            pl.BlockSpec((tb, Lp, 1), lambda b: (b, 0, 0)),
            pl.BlockSpec((K, C), lambda b: (0, 0)),
            pl.BlockSpec((1, C), lambda b: (0, 0)),
            pl.BlockSpec((K * C, C), lambda b: (0, 0)),
            pl.BlockSpec((1, C), lambda b: (0, 0)),
            pl.BlockSpec((K, C), lambda b: (0, 0)),
            pl.BlockSpec((1, 1), lambda b: (0, 0)),
        ],
        out_specs=pl.BlockSpec((1, tb, L), lambda b: (b, 0, 0)),
        scratch_shapes=[
            pltpu.VMEM((tb, Lp, C), jnp.float32),   # padded h1
            pltpu.VMEM((tb, Lp, C), jnp.float32),   # padded h2
        ],
        compiler_params=pltpu.CompilerParams(
            dimension_semantics=("parallel",),
            vmem_limit_bytes=vmem_limit),
    )(x_pad, w1_kc, b1r, w2_flat, b2r, w3_kc, b3r)

    # (n_steps, tb, L) -> (B, 1, L); drop batch padding.
    return out.reshape(b_pad, L)[:B][:, None, :]


# -----------------------------------------------------------------------------
# Parameters (deterministic; mirrors PyTorch default Conv1d init bounds).
# -----------------------------------------------------------------------------
def _conv1d_params(key, cout, cin, k):
    kw, kb = jax.random.split(key)
    bound = 1.0 / float(cin * k) ** 0.5
    w = jax.random.uniform(kw, (cout, cin, k), jnp.float32, -bound, bound)
    b = jax.random.uniform(kb, (cout,), jnp.float32, -bound, bound)
    return w, b


def init_params(key, channels=32):
    k1, k2, k3 = jax.random.split(key, 3)
    return {
        "conv1": _conv1d_params(k1, channels, 1, K),
        "conv2": _conv1d_params(k2, channels, channels, K),
        "conv3": _conv1d_params(k3, 1, channels, K),
    }


# -----------------------------------------------------------------------------
# Plain-JAX reference for a correctness smoke test.
# -----------------------------------------------------------------------------
def _reference_forward(params, x):
    def conv_relu(h, w, b):
        y = lax.conv_general_dilated(
            h, w, window_strides=(1,), padding=((PAD, PAD),),
            dimension_numbers=("NCH", "OIH", "NCH"),
            precision=lax.Precision.HIGHEST)
        return jnp.maximum(y + b[None, :, None], 0.0)

    h = conv_relu(x, *params["conv1"])
    h = conv_relu(h, *params["conv2"])
    h = conv_relu(h, *params["conv3"])
    return h


if __name__ == "__main__":
    key = jax.random.PRNGKey(0)
    kx, kp = jax.random.split(key)
    B, L, C = 2, 16, 32
    x = jax.random.normal(kx, (B, 1, L), jnp.float32)
    params = init_params(kp, channels=C)

    fwd = jax.jit(conv_denoiser_forward)
    out = jax.block_until_ready(fwd(params, x))

    assert out.shape == (B, 1, L), out.shape
    assert bool(jnp.all(jnp.isfinite(out)))
    ref = _reference_forward(params, x)
    assert jnp.allclose(out, ref, rtol=5e-2, atol=5e-2), (
        float(jnp.max(jnp.abs(out - ref))))
    print("KERNEL_OK")
</pallas_src>

<mosaic_0001>
module attributes {stable_mosaic.version = 11 : i64} {
  func.func @_denoiser_kernel(%arg0: i32, %arg1: memref<1x20x1xf32, #tpu.memory_space<vmem>>, %arg2: memref<5x32xf32, #tpu.memory_space<vmem>>, %arg3: memref<1x32xf32, #tpu.memory_space<vmem>>, %arg4: memref<160x32xbf16, #tpu.memory_space<vmem>>, %arg5: memref<1x32xf32, #tpu.memory_space<vmem>>, %arg6: memref<5x32xf32, #tpu.memory_space<vmem>>, %arg7: memref<1x1xf32, #tpu.memory_space<vmem>>, %arg8: memref<1x1x16xf32, #tpu.memory_space<vmem>>, %arg9: memref<1x20x32xf32, #tpu.memory_space<vmem>>, %arg10: memref<1x20x32xf32, #tpu.memory_space<vmem>>) attributes {dimension_semantics = [#tpu.dimension_semantics<parallel>], iteration_bounds = array<i64: 2>, scalar_prefetch = 0 : i64, scratch_operands = 2 : i64, tpu.core_type = #tpu.core_type<tc>, window_params = [{transform_indices = @transform_0, window_bounds = array<i64: 1, 20, 1>}, {pipeline_mode = #tpu.pipeline_mode<synchronous>, transform_indices = @transform_1, window_bounds = array<i64: 5, 32>}, {pipeline_mode = #tpu.pipeline_mode<synchronous>, transform_indices = @transform_2, window_bounds = array<i64: 1, 32>}, {pipeline_mode = #tpu.pipeline_mode<synchronous>, transform_indices = @transform_3, window_bounds = array<i64: 160, 32>}, {pipeline_mode = #tpu.pipeline_mode<synchronous>, transform_indices = @transform_4, window_bounds = array<i64: 1, 32>}, {pipeline_mode = #tpu.pipeline_mode<synchronous>, transform_indices = @transform_5, window_bounds = array<i64: 5, 32>}, {pipeline_mode = #tpu.pipeline_mode<synchronous>, transform_indices = @transform_6, window_bounds = array<i64: 1, 1>}, {transform_indices = @transform_7, window_bounds = array<i64: 1, 1, 16>}]} {
    %cst = arith.constant 0.000000e+00 : f32
    %0 = vector.broadcast %cst : f32 to vector<1x2x32xf32>
    %c0 = arith.constant 0 : index
    %c0_0 = arith.constant 0 : index
    %c0_1 = arith.constant 0 : index
    %1 = vector.load %arg9[%c0, %c0_0, %c0_1] : memref<1x20x32xf32, #tpu.memory_space<vmem>>, vector<1x2x32xf32>
    tpu.vector_store %arg9[%c0, %c0_0, %c0_1], %0 {strides = array<i32>} : memref<1x20x32xf32, #tpu.memory_space<vmem>>, vector<1x2x32xf32>,
    %c0_2 = arith.constant 0 : index
    %c18 = arith.constant 18 : index
    %c0_3 = arith.constant 0 : index
    %2 = vector.load %arg9[%c0_2, %c18, %c0_3] : memref<1x20x32xf32, #tpu.memory_space<vmem>>, vector<1x2x32xf32>
    tpu.vector_store %arg9[%c0_2, %c18, %c0_3], %0 {strides = array<i32>} : memref<1x20x32xf32, #tpu.memory_space<vmem>>, vector<1x2x32xf32>,
    %c0_4 = arith.constant 0 : index
    %c0_5 = arith.constant 0 : index
    %c0_6 = arith.constant 0 : index
    %3 = vector.load %arg10[%c0_4, %c0_5, %c0_6] : memref<1x20x32xf32, #tpu.memory_space<vmem>>, vector<1x2x32xf32>
    tpu.vector_store %arg10[%c0_4, %c0_5, %c0_6], %0 {strides = array<i32>} : memref<1x20x32xf32, #tpu.memory_space<vmem>>, vector<1x2x32xf32>,
    %c0_7 = arith.constant 0 : index
    %c18_8 = arith.constant 18 : index
    %c0_9 = arith.constant 0 : index
    %4 = vector.load %arg10[%c0_7, %c18_8, %c0_9] : memref<1x20x32xf32, #tpu.memory_space<vmem>>, vector<1x2x32xf32>
    tpu.vector_store %arg10[%c0_7, %c18_8, %c0_9], %0 {strides = array<i32>} : memref<1x20x32xf32, #tpu.memory_space<vmem>>, vector<1x2x32xf32>,
    %c0_10 = arith.constant 0 : index
    %c0_11 = arith.constant 0 : index
    %c0_12 = arith.constant 0 : index
    %5 = vector.load %arg1[%c0_10, %c0_11, %c0_12] : memref<1x20x1xf32, #tpu.memory_space<vmem>>, vector<1x20x1xf32>
    %6 = vector.shape_cast %5 : vector<1x20x1xf32> to vector<1x20x1xf32>
    %7 = vector.broadcast %6 : vector<1x20x1xf32> to vector<1x20x32xf32>
    %c0_13 = arith.constant 0 : index
    %c0_14 = arith.constant 0 : index
    %8 = vector.load %arg2[%c0_13, %c0_14] : memref<5x32xf32, #tpu.memory_space<vmem>>, vector<5x32xf32>
    %9 = vector.extract_strided_slice %7 {offsets = [0, 0, 0], sizes = [1, 16, 32], strides = [1, 1, 1]} : vector<1x20x32xf32> to vector<1x16x32xf32>
    %10 = vector.extract_strided_slice %8 {offsets = [0, 0], sizes = [1, 32], strides = [1, 1]} : vector<5x32xf32> to vector<1x32xf32>
    %11 = vector.shape_cast %10 : vector<1x32xf32> to vector<32xf32>
    %12 = vector.shape_cast %11 : vector<32xf32> to vector<1x1x32xf32>
    %13 = vector.broadcast %12 : vector<1x1x32xf32> to vector<1x16x32xf32>
    %14 = arith.mulf %9, %13 : vector<1x16x32xf32>
    %15 = vector.extract_strided_slice %7 {offsets = [0, 1, 0], sizes = [1, 16, 32], strides = [1, 1, 1]} : vector<1x20x32xf32> to vector<1x16x32xf32>
    %16 = vector.extract_strided_slice %8 {offsets = [1, 0], sizes = [1, 32], strides = [1, 1]} : vector<5x32xf32> to vector<1x32xf32>
    %17 = vector.shape_cast %16 : vector<1x32xf32> to vector<32xf32>
    %18 = vector.shape_cast %17 : vector<32xf32> to vector<1x1x32xf32>
    %19 = vector.broadcast %18 : vector<1x1x32xf32> to vector<1x16x32xf32>
    %20 = arith.mulf %15, %19 : vector<1x16x32xf32>
    %21 = arith.addf %14, %20 : vector<1x16x32xf32>
    %22 = vector.extract_strided_slice %7 {offsets = [0, 2, 0], sizes = [1, 16, 32], strides = [1, 1, 1]} : vector<1x20x32xf32> to vector<1x16x32xf32>
    %23 = vector.extract_strided_slice %8 {offsets = [2, 0], sizes = [1, 32], strides = [1, 1]} : vector<5x32xf32> to vector<1x32xf32>
    %24 = vector.shape_cast %23 : vector<1x32xf32> to vector<32xf32>
    %25 = vector.shape_cast %24 : vector<32xf32> to vector<1x1x32xf32>
    %26 = vector.broadcast %25 : vector<1x1x32xf32> to vector<1x16x32xf32>
    %27 = arith.mulf %22, %26 : vector<1x16x32xf32>
    %28 = arith.addf %21, %27 : vector<1x16x32xf32>
    %29 = vector.extract_strided_slice %7 {offsets = [0, 3, 0], sizes = [1, 16, 32], strides = [1, 1, 1]} : vector<1x20x32xf32> to vector<1x16x32xf32>
    %30 = vector.extract_strided_slice %8 {offsets = [3, 0], sizes = [1, 32], strides = [1, 1]} : vector<5x32xf32> to vector<1x32xf32>
    %31 = vector.shape_cast %30 : vector<1x32xf32> to vector<32xf32>
    %32 = vector.shape_cast %31 : vector<32xf32> to vector<1x1x32xf32>
    %33 = vector.broadcast %32 : vector<1x1x32xf32> to vector<1x16x32xf32>
    %34 = arith.mulf %29, %33 : vector<1x16x32xf32>
    %35 = arith.addf %28, %34 : vector<1x16x32xf32>
    %36 = vector.extract_strided_slice %7 {offsets = [0, 4, 0], sizes = [1, 16, 32], strides = [1, 1, 1]} : vector<1x20x32xf32> to vector<1x16x32xf32>
    %37 = vector.extract_strided_slice %8 {offsets = [4, 0], sizes = [1, 32], strides = [1, 1]} : vector<5x32xf32> to vector<1x32xf32>
    %38 = vector.shape_cast %37 : vector<1x32xf32> to vector<32xf32>
    %39 = vector.shape_cast %38 : vector<32xf32> to vector<1x1x32xf32>
    %40 = vector.broadcast %39 : vector<1x1x32xf32> to vector<1x16x32xf32>
    %41 = arith.mulf %36, %40 : vector<1x16x32xf32>
    %42 = arith.addf %35, %41 : vector<1x16x32xf32>
    %c0_15 = arith.constant 0 : index
    %c0_16 = arith.constant 0 : index
    %43 = vector.load %arg3[%c0_15, %c0_16] : memref<1x32xf32, #tpu.memory_space<vmem>>, vector<1x32xf32>
    %44 = vector.shape_cast %43 : vector<1x32xf32> to vector<1x1x32xf32>
    %45 = vector.broadcast %44 : vector<1x1x32xf32> to vector<1x16x32xf32>
    %46 = arith.addf %42, %45 : vector<1x16x32xf32>
    %cst_17 = arith.constant 0.000000e+00 : f32
    %47 = vector.broadcast %cst_17 : f32 to vector<1x16x32xf32>
    %48 = arith.maximumf %46, %47 : vector<1x16x32xf32>
    %c0_18 = arith.constant 0 : index
    %c2 = arith.constant 2 : index
    %c0_19 = arith.constant 0 : index
    %49 = vector.load %arg9[%c0_18, %c2, %c0_19] : memref<1x20x32xf32, #tpu.memory_space<vmem>>, vector<1x16x32xf32>
    tpu.vector_store %arg9[%c0_18, %c2, %c0_19], %48 {strides = array<i32>} : memref<1x20x32xf32, #tpu.memory_space<vmem>>, vector<1x16x32xf32>,
    %c0_20 = arith.constant 0 : index
    %c0_21 = arith.constant 0 : index
    %c0_22 = arith.constant 0 : index
    %50 = vector.load %arg9[%c0_20, %c0_21, %c0_22] : memref<1x20x32xf32, #tpu.memory_space<vmem>>, vector<1x20x32xf32>
    %51 = vector.extract_strided_slice %50 {offsets = [0, 0, 0], sizes = [1, 16, 32], strides = [1, 1, 1]} : vector<1x20x32xf32> to vector<1x16x32xf32>
    %52 = vector.extract_strided_slice %50 {offsets = [0, 1, 0], sizes = [1, 16, 32], strides = [1, 1, 1]} : vector<1x20x32xf32> to vector<1x16x32xf32>
    %53 = vector.extract_strided_slice %50 {offsets = [0, 2, 0], sizes = [1, 16, 32], strides = [1, 1, 1]} : vector<1x20x32xf32> to vector<1x16x32xf32>
    %54 = vector.extract_strided_slice %50 {offsets = [0, 3, 0], sizes = [1, 16, 32], strides = [1, 1, 1]} : vector<1x20x32xf32> to vector<1x16x32xf32>
    %55 = vector.extract_strided_slice %50 {offsets = [0, 4, 0], sizes = [1, 16, 32], strides = [1, 1, 1]} : vector<1x20x32xf32> to vector<1x16x32xf32>
    %56 = tpu.concatenate %51, %52, %53, %54, %55 in 2 : vector<1x16x32xf32>, vector<1x16x32xf32>, vector<1x16x32xf32>, vector<1x16x32xf32>, vector<1x16x32xf32> -> vector<1x16x160xf32>
    %57 = vector.shape_cast %56 : vector<1x16x160xf32> to vector<16x160xf32>
    %58 = arith.truncf %57 : vector<16x160xf32> to vector<16x160xbf16>
    %c0_23 = arith.constant 0 : index
    %c0_24 = arith.constant 0 : index
    %59 = vector.load %arg4[%c0_23, %c0_24] : memref<160x32xbf16, #tpu.memory_space<vmem>>, vector<160x32xbf16>
    %cst_25 = arith.constant dense<0.000000e+00> : vector<16x32xf32>
    %60 = tpu.matmul %58, %59, %cst_25 {dimension_numbers = #tpu.dot_dimension_numbers<[1], [0], [0], [1], [0, 0, 1, 1], [], []>} : vector<16x160xbf16>, vector<160x32xbf16>, vector<16x32xf32> -> vector<16x32xf32>
    %c0_26 = arith.constant 0 : index
    %c0_27 = arith.constant 0 : index
    %61 = vector.load %arg5[%c0_26, %c0_27] : memref<1x32xf32, #tpu.memory_space<vmem>>, vector<1x32xf32>
    %62 = vector.broadcast %61 : vector<1x32xf32> to vector<16x32xf32>
    %63 = arith.addf %60, %62 : vector<16x32xf32>
    %cst_28 = arith.constant 0.000000e+00 : f32
    %64 = vector.broadcast %cst_28 : f32 to vector<16x32xf32>
    %65 = arith.maximumf %63, %64 : vector<16x32xf32>
    %66 = vector.shape_cast %65 : vector<16x32xf32> to vector<1x16x32xf32>
    %c0_29 = arith.constant 0 : index
    %c2_30 = arith.constant 2 : index
    %c0_31 = arith.constant 0 : index
    %67 = vector.load %arg10[%c0_29, %c2_30, %c0_31] : memref<1x20x32xf32, #tpu.memory_space<vmem>>, vector<1x16x32xf32>
    tpu.vector_store %arg10[%c0_29, %c2_30, %c0_31], %66 {strides = array<i32>} : memref<1x20x32xf32, #tpu.memory_space<vmem>>, vector<1x16x32xf32>,
    %c0_32 = arith.constant 0 : index
    %c0_33 = arith.constant 0 : index
    %c0_34 = arith.constant 0 : index
    %68 = vector.load %arg10[%c0_32, %c0_33, %c0_34] : memref<1x20x32xf32, #tpu.memory_space<vmem>>, vector<1x20x32xf32>
    %c0_35 = arith.constant 0 : index
    %c0_36 = arith.constant 0 : index
    %69 = vector.load %arg6[%c0_35, %c0_36] : memref<5x32xf32, #tpu.memory_space<vmem>>, vector<5x32xf32>
    %70 = vector.extract_strided_slice %68 {offsets = [0, 0, 0], sizes = [1, 16, 32], strides = [1, 1, 1]} : vector<1x20x32xf32> to vector<1x16x32xf32>
    %71 = vector.extract_strided_slice %69 {offsets = [0, 0], sizes = [1, 32], strides = [1, 1]} : vector<5x32xf32> to vector<1x32xf32>
    %72 = vector.shape_cast %71 : vector<1x32xf32> to vector<32xf32>
    %73 = vector.shape_cast %72 : vector<32xf32> to vector<1x1x32xf32>
    %74 = vector.broadcast %73 : vector<1x1x32xf32> to vector<1x16x32xf32>
    %75 = arith.mulf %70, %74 : vector<1x16x32xf32>
    %76 = vector.extract_strided_slice %68 {offsets = [0, 1, 0], sizes = [1, 16, 32], strides = [1, 1, 1]} : vector<1x20x32xf32> to vector<1x16x32xf32>
    %77 = vector.extract_strided_slice %69 {offsets = [1, 0], sizes = [1, 32], strides = [1, 1]} : vector<5x32xf32> to vector<1x32xf32>
    %78 = vector.shape_cast %77 : vector<1x32xf32> to vector<32xf32>
    %79 = vector.shape_cast %78 : vector<32xf32> to vector<1x1x32xf32>
    %80 = vector.broadcast %79 : vector<1x1x32xf32> to vector<1x16x32xf32>
    %81 = arith.mulf %76, %80 : vector<1x16x32xf32>
    %82 = arith.addf %75, %81 : vector<1x16x32xf32>
    %83 = vector.extract_strided_slice %68 {offsets = [0, 2, 0], sizes = [1, 16, 32], strides = [1, 1, 1]} : vector<1x20x32xf32> to vector<1x16x32xf32>
    %84 = vector.extract_strided_slice %69 {offsets = [2, 0], sizes = [1, 32], strides = [1, 1]} : vector<5x32xf32> to vector<1x32xf32>
    %85 = vector.shape_cast %84 : vector<1x32xf32> to vector<32xf32>
    %86 = vector.shape_cast %85 : vector<32xf32> to vector<1x1x32xf32>
    %87 = vector.broadcast %86 : vector<1x1x32xf32> to vector<1x16x32xf32>
    %88 = arith.mulf %83, %87 : vector<1x16x32xf32>
    %89 = arith.addf %82, %88 : vector<1x16x32xf32>
    %90 = vector.extract_strided_slice %68 {offsets = [0, 3, 0], sizes = [1, 16, 32], strides = [1, 1, 1]} : vector<1x20x32xf32> to vector<1x16x32xf32>
    %91 = vector.extract_strided_slice %69 {offsets = [3, 0], sizes = [1, 32], strides = [1, 1]} : vector<5x32xf32> to vector<1x32xf32>
    %92 = vector.shape_cast %91 : vector<1x32xf32> to vector<32xf32>
    %93 = vector.shape_cast %92 : vector<32xf32> to vector<1x1x32xf32>
    %94 = vector.broadcast %93 : vector<1x1x32xf32> to vector<1x16x32xf32>
    %95 = arith.mulf %90, %94 : vector<1x16x32xf32>
    %96 = arith.addf %89, %95 : vector<1x16x32xf32>
    %97 = vector.extract_strided_slice %68 {offsets = [0, 4, 0], sizes = [1, 16, 32], strides = [1, 1, 1]} : vector<1x20x32xf32> to vector<1x16x32xf32>
    %98 = vector.extract_strided_slice %69 {offsets = [4, 0], sizes = [1, 32], strides = [1, 1]} : vector<5x32xf32> to vector<1x32xf32>
    %99 = vector.shape_cast %98 : vector<1x32xf32> to vector<32xf32>
    %100 = vector.shape_cast %99 : vector<32xf32> to vector<1x1x32xf32>
    %101 = vector.broadcast %100 : vector<1x1x32xf32> to vector<1x16x32xf32>
    %102 = arith.mulf %97, %101 : vector<1x16x32xf32>
    %103 = arith.addf %96, %102 : vector<1x16x32xf32>
    %cst_37 = arith.constant dense<0.000000e+00> : vector<1x16xf32>
    %104 = vector.multi_reduction <add>, %103, %cst_37 [2] : vector<1x16x32xf32> to vector<1x16xf32>
    %c0_38 = arith.constant 0 : index
    %c0_39 = arith.constant 0 : index
    %105 = vector.load %arg7[%c0_38, %c0_39] : memref<1x1xf32, #tpu.memory_space<vmem>>, vector<1x1xf32>
    %106 = vector.broadcast %105 : vector<1x1xf32> to vector<1x16xf32>
    %107 = arith.addf %104, %106 : vector<1x16xf32>
    %cst_40 = arith.constant 0.000000e+00 : f32
    %108 = vector.broadcast %cst_40 : f32 to vector<1x16xf32>
    %109 = arith.maximumf %107, %108 : vector<1x16xf32>
    %c0_41 = arith.constant 0 : index
    %c0_42 = arith.constant 0 : index
    %c0_43 = arith.constant 0 : index
    %110 = vector.load %arg8[%c0_41, %c0_42, %c0_43] : memref<1x1x16xf32, #tpu.memory_space<vmem>>, vector<1x1x16xf32>
    %111 = vector.shape_cast %110 : vector<1x1x16xf32> to vector<1x16xf32>
    %112 = vector.shape_cast %109 : vector<1x16xf32> to vector<1x1x16xf32>
    tpu.vector_store %arg8[%c0_41, %c0_42, %c0_43], %112 {strides = array<i32>} : memref<1x1x16xf32, #tpu.memory_space<vmem>>, vector<1x1x16xf32>,
    return
  }
  func.func @transform_0(%arg0: i32) -> (i32, i32, i32) {
    %c0_i32 = arith.constant 0 : i32
    %c0_i32_0 = arith.constant 0 : i32
    %c0_i32_1 = arith.constant 0 : i32
    return %arg0, %c0_i32, %c0_i32_0 : i32, i32, i32
  }
  func.func @transform_1(%arg0: i32) -> (i32, i32) {
    %c0_i32 = arith.constant 0 : i32
    %c0_i32_0 = arith.constant 0 : i32
    %c0_i32_1 = arith.constant 0 : i32
    return %c0_i32, %c0_i32_0 : i32, i32
  }
  func.func @transform_2(%arg0: i32) -> (i32, i32) {
    %c0_i32 = arith.constant 0 : i32
    %c0_i32_0 = arith.constant 0 : i32
    %c0_i32_1 = arith.constant 0 : i32
    return %c0_i32, %c0_i32_0 : i32, i32
  }
  func.func @transform_3(%arg0: i32) -> (i32, i32) {
    %c0_i32 = arith.constant 0 : i32
    %c0_i32_0 = arith.constant 0 : i32
    %c0_i32_1 = arith.constant 0 : i32
    return %c0_i32, %c0_i32_0 : i32, i32
  }
  func.func @transform_4(%arg0: i32) -> (i32, i32) {
    %c0_i32 = arith.constant 0 : i32
    %c0_i32_0 = arith.constant 0 : i32
    %c0_i32_1 = arith.constant 0 : i32
    return %c0_i32, %c0_i32_0 : i32, i32
  }
  func.func @transform_5(%arg0: i32) -> (i32, i32) {
    %c0_i32 = arith.constant 0 : i32
    %c0_i32_0 = arith.constant 0 : i32
    %c0_i32_1 = arith.constant 0 : i32
    return %c0_i32, %c0_i32_0 : i32, i32
  }
  func.func @transform_6(%arg0: i32) -> (i32, i32) {
    %c0_i32 = arith.constant 0 : i32
    %c0_i32_0 = arith.constant 0 : i32
    %c0_i32_1 = arith.constant 0 : i32
    return %c0_i32, %c0_i32_0 : i32, i32
  }
  func.func @transform_7(%arg0: i32) -> (i32, i32, i32) {
    %c0_i32 = arith.constant 0 : i32
    %c0_i32_0 = arith.constant 0 : i32
    %c0_i32_1 = arith.constant 0 : i32
    return %arg0, %c0_i32, %c0_i32_0 : i32, i32, i32
  }
}

</mosaic_0001>

<bundles_post_ra>
// kernel: conv_denoiser_forward.1
= control target key start
LH: loop header
LB: loop body
LE: loop exit
PB: predicated region body
PF: predicated region fallthrough
CT: control target
= control target key end

     0   :  { %s1211_s0 = inlined_call_operand.vmem [shape: f32[2,20,1], index: 0, kind: input, shape index: {}]   ;;  %s1212_s1 = inlined_call_operand.vmem [shape: f32[5,32], index: 1, kind: input, shape index: {}]   ;;  %s1213_s2 = inlined_call_operand.vmem [shape: f32[1,32], index: 2, kind: input, shape index: {}]   ;;  %s1214_s3 = inlined_call_operand.vmem [shape: bf16[160,32], index: 3, kind: input, shape index: {}]   ;;  %s1215_s4 = inlined_call_operand.vmem [shape: f32[1,32], index: 4, kind: input, shape index: {}]   ;;  %s1216_s5 = inlined_call_operand.vmem [shape: f32[5,32], index: 5, kind: input, shape index: {}]   ;;  %s1217_s6 = inlined_call_operand.<no memory space> [shape: f32[1,1], index: 6, kind: input, shape index: {}]   ;;  %s1218_s7 = inlined_call_operand.hbm [shape: f32[2,1,16], index: 7, kind: output, shape index: {}]  }
   0x1   :  { %v12_v0 = vstv %s1217_s6 }
   0x2   :  { %13 = vst [vmem:[#allocation4] sm:$0x1] %v12_v0 }
   0x3   :  { %14 = vsyncpa [#allocation6], 0 }
   0x4   :  { %16 = vsyncpa [#allocation6 + $0x1], 0  ;;  %s992_s26 = smov 0   ;;  %s994_s27 = smov 0  }
   0x5   :  { %s996_s28 = smov 0   ;;  %s998_s29 = smov 0  }
   0x6 LB: > { %s1013_s6 = sadd.s32 4294967295, %s941_s29   ;;  %s786_s30 = sadd.s32 4294967294, %s941_s29   ;;  %s941_s29 = sphi %s998_s29, %s1224_s29   ;;  %s937_s28 = sphi %s996_s28, %s1223_s28   ;;  %s933_s27 = sphi %s994_s27, %s1222_s27   ;;  %s929_s26 = sphi %s992_s26, %s1221_s26  }
   0x7   : > { %s1017_s8 = sadd.s32 1, %s941_s29   ;;  %s181_s9 = sadd.s32 1, %s937_s28 }
   0x8   : > { %s178_s10 = ssub.s32 %s941_s29, %s1017_s8  ;;  %p191_p0 = scmp.ne.s32.totalorder %s937_s28, %s933_s27 }
   0x9   : > { %p179_p1 = scmp.eq.s32.totalorder %s178_s10, 0  ;;  %p192_p2 = scmp.eq.s32.totalorder %s1013_s6, 1 }
   0xa   : > { %p197_p3 = scmp.ne.s32.totalorder %s933_s27, %s929_s26  ;;  %p198_p4 = scmp.eq.s32.totalorder %s786_s30, 1 }
   0xb   : > { %s1028_s11 = scalar_select %p179_p1, %s937_s28, %s181_s9  }
   0xc   : > { %p1030_p5 = por %p192_p2, %p191_p0  ;;  %p1034_p6 = por %p198_p4, %p197_p3 }
   0xd   : > { %p789_p7 = scmp.ge.s32.totalorder %s941_s29, 1  ;;  %p242_p8 = scmp.lt.s32.totalorder %s941_s29, 3 }
   0xf   : > { %p243_p9 = pnand %p789_p7, %p242_p8 }
  0x10   : > { %p273_p10 = scmp.lt.s32.totalorder (!%p243_p9), %s1013_s6, 1  ;;  %v943_v1 = vmov (!%p243_p9), 0   ;;  %vm279_vm0 = vcmask (!%p243_p9), 254976   ;;  %v944_v5 = vmov (!%p243_p9), 0.0   ;;  %v869_v6 = vld [vmem:[%s1214_s3] sm:$0xff] (!%p243_p9)   ;;  %v870_v7 = vld [vmem:[%s1214_s3 + $0x8] sm:$0xff] (!%p243_p9)   ;;  %v298_v14 = vlaneseq (!%p243_p9) }
  0x11   : > { %246 = sbr.rel (%p243_p9) target bundleno = 732 (0x2dc), region = 48  ;;  %852 = vset.pattern.permute.xlu0 (!%p243_p9), %v943_v1  ;;  %853 = vset.pattern.permute.xlu1 (!%p243_p9), %v943_v1  ;;  %280 = vst.msk [vmem:[#allocation2] sm:$0x3] (!%p243_p9), %vm279_vm0, %v944_v5  ;;  %281 = vst.msk [vmem:[#allocation2 + $0x12] sm:$0x3] (!%p243_p9), %vm279_vm0, %v944_v5  ;;  %v871_v8 = vld [vmem:[%s1214_s3 + $0x10] sm:$0xff] (!%p243_p9)  }
  0x12   : > { %549 = vmatprep.subr.bf16.mxu0 (!%p243_p9), %v943_v1  ;;  %282 = vst.msk [vmem:[#allocation3] sm:$0x3] (!%p243_p9), %vm279_vm0, %v944_v5  ;;  %283 = vst.msk [vmem:[#allocation3 + $0x12] sm:$0x3] (!%p243_p9), %vm279_vm0, %v944_v5  ;;  %v872_v9 = vld [vmem:[%s1214_s3 + $0x18] sm:$0xff] (!%p243_p9)   ;;  %v873_v10 = vld [vmem:[%s1214_s3 + $0x20] sm:$0xff] (!%p243_p9)  }
  0x13   : > { %550 = vmatpush1.bf16.msra.mxu0 (!%p243_p9), %v869_v6  ;;  %v874_v11 = vld [vmem:[%s1214_s3 + $0x28] sm:$0xff] (!%p243_p9)   ;;  %v875_v12 = vld [vmem:[%s1214_s3 + $0x30] sm:$0xff] (!%p243_p9)   ;;  %v876_v13 = vld [vmem:[%s1214_s3 + $0x38] sm:$0xff] (!%p243_p9)   ;;  %v1081_v15 = vshrl.u32 (!%p243_p9), %v298_v14, 7  ;;  %vm319_vm1 = vcmask (!%p243_p9), 1046528   ;;  %vm339_vm2 = vcmask (!%p243_p9), 1045504  }
  0x14   : > { %551 = vmatprep.subr.bf16.mxu0 (!%p243_p9), %v943_v1  ;;  %v287_v17 = vld [vmem:[%s1212_s1] sm:$0x1f] (!%p243_p9)  ;;  %vm359_vm3 = vcmask (!%p243_p9), 1044480   ;;  %vm379_vm4 = vcmask (!%p243_p9), 1043456   ;;  %vm400_vm5 = vcmask (!%p243_p9), 261120   ;;  %s945_s10 = smov (!%p243_p9), 64  }
  0x15   : > { %v311_v16 = vsub.s32 (!%p243_p9), 1, %v1081_v15  ;;  %v331_v18 = vsub.s32 (!%p243_p9), 2, %v1081_v15  ;;  %v351_v20 = vsub.s32 (!%p243_p9), 3, %v1081_v15  ;;  %v1092_v21 = vsub.s32 (!%p243_p9), 0, %v1081_v15  ;;  %s271_s20 = sand.u32 (!%p243_p9), 1, %s933_s27   ;;  %s804_s21 = sshll.u32 (!%p243_p9), %s1013_s6, 4 }
  0x16   : > { %v371_v23 = vsub.s32 (!%p243_p9), 4, %v1081_v15  ;;  %vm451_vm6 = vcmask (!%p243_p9), 523264   ;;  %vm454_vm7 = vcmask (!%p243_p9), 785408   ;;  %s272_s22 = scalar_lea.vmem (!%p243_p9), [#allocation5], %s271_s20  ;;  %vm713_vm8 = vcmask (!%p243_p9), 130112   ;;  %s1169_s30 = scalar_lea.hbm (!%p243_p9), %s1218_s7, %s804_s21 }
  0x17   : > { %552 = vmatpush1.bf16.msra.mxu0 (!%p243_p9), %v870_v7  ;;  %v312_v19 = vrot.slane (!%p243_p9), %v287_v17, %v311_v16  ;;  %v332_v22 = vrot.slane (!%p243_p9), %v287_v17, %v331_v18  ;;  %v352_v26 = vrot.slane (!%p243_p9), %v287_v17, %v351_v20  ;;  %v301_v29 = vrot.slane (!%p243_p9), %v287_v17, %v1092_v21  ;;  %v791_v7 = vld [vmem:[%s1213_s2] ss:$0 sm:$0xff] (!%p243_p9)  ;;  %s731_s23 = sshll.u32 (!%p243_p9), %s272_s22, 4  ;;  %s719_s9 = scalar_lea.sflag (!%p243_p9), [#allocation6], %s271_s20  ;;  %s1171_s23 = int_to_ptr.vmem [resolvable:$true] %s731_s23 }
  0x18   : > { %s274_s14 = scalar_select %p273_p10, %s1013_s6, 1  ;;  %553 = vmatprep.subr.bf16.mxu0 %v943_v1  ;;  %v372_v31 = vrot.slane %v287_v17, %v371_v23  ;;  %v877_v17 = vld [vmem:[%s1214_s3 + $0x40] sm:$0xff]   ;;  %vm716_vm9 = vcmask 122880  }
  0x19   : > { %s879_s6 = scalar_lea.vmem %s1171_s23, 16 }
  0x1a   : > { %s807_s15 = smul.u32 24, %s274_s14  ;;  %s946_s14 = smov 32  }
  0x1b   : > { %554 = vmatpush1.bf16.msra.mxu0 %v871_v8  ;;  %p880_p11 = scmp.ne.s32.totalorder %s1171_s23, %s879_s6 }
  0x1c   : > { %s277_s18 = scalar_lea.vmem %s1211_s0, %s807_s15  ;;  %555 = vmatprep.subr.bf16.mxu0 %v943_v1  ;;  %s947_s15 = smov 96  }
  0x1d   : > { %v284_v2 = vld [vmem:[%s277_s18] sm:$0xff]  ;;  %v286_v3 = vld [vmem:[%s277_s18 + $0x10] sm:$0xf]  ;;  %v285_v4 = vld [vmem:[%s277_s18 + $0x8] sm:$0xff]  ;;  %p881_p12 = pnand %p880_p11, %p1030_p5 }
  0x1e   : > { %290 = vperm.xlu0 %852, %v284_v2   ;;  %306 = vperm.xlu1 %853, %v286_v3  }
  0x1f   : > { %556 = vmatpush1.bf16.msra.mxu0 %v872_v9  ;;  %p882_p13 = pneg %p881_p12 }
  0x20   : > { %557 = vmatprep.subr.bf16.mxu0 %v943_v1 }
  0x22   : > { %295 = vperm.xlu0 %852, %v285_v4  }
  0x23   : > { %558 = vmatpush1.bf16.msra.mxu0 %v873_v10 }
  0x24   : > { %559 = vmatprep.subr.bf16.mxu0 %v943_v1 }
  0x27   : > { %560 = vmatpush1.bf16.msra.mxu0 %v874_v11 }
  0x28   : > { %561 = vmatprep.subr.bf16.mxu0 %v943_v1 }
  0x2b   : > { %562 = vmatpush1.bf16.msra.mxu0 %v875_v12 }
  0x2c   : > { %563 = vmatprep.subr.bf16.mxu0 %v943_v1 }
  0x2f   : > { %564 = vmatpush1.bf16.msra.mxu0 %v876_v13 }
  0x30   : > { %565 = vmatprep.subr.bf16.mxu0 %v943_v1 }
  0x33   : > { %566 = vmatpush1.bf16.msra.mxu0 %v877_v17 }
  0x34   : > { %567 = vmatprep.subr.bf16.mxu0 %v943_v1 }
  0x9d   : > { %v291_v24 = vpop.permute.xlu0 %290  ;;  %v307_v25 = vpop.permute.xlu1 %306 }
  0x9e   : > { %v313_v27 = vmul.f32 %v312_v19, %v291_v24  ;;  %v315_v28 = vmul.f32 %v312_v19, %v307_v25  ;;  %v335_v30 = vmul.f32 %v332_v22, %v307_v25  ;;  %v333_v32 = vmul.f32 %v332_v22, %v291_v24 }
  0x9f   : > { %v355_v35 = vmul.f32 %v352_v26, %v307_v25  ;;  %v353_v39 = vmul.f32 %v352_v26, %v291_v24  ;;  %v375_v40 = vmul.f32 %v372_v31, %v307_v25  ;;  %v302_v46 = vmul.f32 %v301_v29, %v291_v24 }
  0xa0   : > { %v323_v34 = vrot.slane %v315_v28, 1  ;;  %v320_v38 = vrot.slane %v313_v27, 1  ;;  %v343_v42 = vrot.slane %v335_v30, 2  ;;  %v340_v47 = vrot.slane %v333_v32, 2 }
  0xa1   : > { %v296_v33 = vpop.permute.xlu0 %295  ;;  %v373_v48 = vmul.f32 %v372_v31, %v291_v24  ;;  %v363_v50 = vrot.slane %v355_v35, 3  ;;  %v360_v54 = vrot.slane %v353_v39, 3  ;;  %v383_v57 = vrot.slane %v375_v40, 4 }
  0xa2   : > { %v314_v36 = vmul.f32 %v312_v19, %v296_v33  ;;  %v334_v37 = vmul.f32 %v332_v22, %v296_v33  ;;  %v354_v41 = vmul.f32 %v352_v26, %v296_v33  ;;  %v374_v45 = vmul.f32 %v372_v31, %v296_v33  ;;  %v878_v19 = vld [vmem:[%s1214_s3 + $0x48] sm:$0xff]  }
  0xa3   : > { %v303_v49 = vmul.f32 %v301_v29, %v296_v33  ;;  %v380_v63 = vrot.slane %v373_v48, 4  ;;  %568 = vmatpush1.bf16.msra.mxu0 %v878_v19 }
  0xa4   : > { %v321_v43 = vrot.slane %v314_v36, 1  ;;  %v341_v44 = vrot.slane %v334_v37, 2  ;;  %v361_v53 = vrot.slane %v354_v41, 3  ;;  %v381_v60 = vrot.slane %v374_v45, 4 }
  0xa6   : > { %v322_v51 = vsel %vm319_vm1, %v320_v38, %v321_v43  ;;  %v324_v52 = vsel %vm319_vm1, %v321_v43, %v323_v34  ;;  %v342_v58 = vsel %vm339_vm2, %v340_v47, %v341_v44  ;;  %v344_v59 = vsel %vm339_vm2, %v341_v44, %v343_v42 }
  0xa7   : > { %v327_v55 = vadd.f32 %v322_v51, %v302_v46  ;;  %v328_v56 = vadd.f32 %v324_v52, %v303_v49  ;;  %v362_v0 = vsel %vm359_vm3, %v360_v54, %v361_v53  ;;  %v364_v2 = vsel %vm359_vm3, %v361_v53, %v363_v50 }
  0xa8   : > { %v382_v5 = vsel %vm379_vm4, %v380_v63, %v381_v60  ;;  %v384_v6 = vsel %vm379_vm4, %v381_v60, %v383_v57 }
  0xa9   : > { %v347_v61 = vadd.f32 %v342_v58, %v327_v55  ;;  %v348_v62 = vadd.f32 %v344_v59, %v328_v56 }
  0xab   : > { %v367_v3 = vadd.f32 %v362_v0, %v347_v61  ;;  %v368_v4 = vadd.f32 %v364_v2, %v348_v62  ;;  %v792_v2 = vld [vmem:[%s1215_s4] ss:$0 sm:$0xff] }
  0xad   : > { %v387_v8 = vadd.f32 %v382_v5, %v367_v3  ;;  %v388_v9 = vadd.f32 %v384_v6, %v368_v4 }
  0xaf   : > { %v396_v10 = vadd.f32 %v791_v7, %v387_v8  ;;  %v397_v11 = vadd.f32 %v791_v7, %v388_v9 }
  0xb1   : > { %v398_v12 = vmax.f32 %v396_v10, 0.0  ;;  %v399_v13 = vmax.f32 %v397_v11, 0.0  ;;  %v597_v11 = vld [vmem:[%s1216_s5] sm:$0x1f] }
  0xb3   : > { %401 = vst.msk [vmem:[#allocation2 + $0x2] sm:$0xff] %vm400_vm5, %v398_v12  ;;  %402 = vst.msk [vmem:[#allocation2 + $0xa] sm:$0xff] %vm400_vm5, %v399_v13  ;;  %v607_v12 = vrot.slane %v597_v11, %v311_v16  ;;  %v626_v13 = vrot.slane %v597_v11, %v331_v18 }
  0xba   : > { %v403_v22 = vld [vmem:[#allocation2] sm:$0xff]  ;;  %v404_v24 = vld [vmem:[#allocation2 + $0x8] sm:$0xff]  ;;  %v405_v25 = vld [vmem:[#allocation2 + $0x10] sm:$0xf] }
  0xbb   : > { %v442_v26 = vrot.slane %v403_v22, 4  ;;  %v443_v27 = vrot.slane %v404_v24, 4  ;;  %v445_v28 = vrot.slane %v405_v25, 4  ;;  %v420_v29 = vrot.slane %v403_v22, 2 }
  0xbc   : > { %v421_v30 = vrot.slane %v404_v24, 2  ;;  %v423_v31 = vrot.slane %v405_v25, 2  ;;  %v409_v32 = vrot.slane %v403_v22, 1  ;;  %v410_v33 = vrot.slane %v404_v24, 1 }
  0xbd   : > { %v444_v34 = vsel %vm379_vm4, %v442_v26, %v443_v27  ;;  %v446_v35 = vsel %vm379_vm4, %v443_v27, %v445_v28  ;;  %v412_v36 = vrot.slane %v405_v25, 1  ;;  %v431_v37 = vrot.slane %v403_v22, 3 }
  0xbe   : > { %v458_v38 = vpack.c.bf16 %v446_v35, %v444_v34  ;;  %v422_v39 = vsel %vm339_vm2, %v420_v29, %v421_v30  ;;  %v424_v1 = vsel %vm339_vm2, %v421_v30, %v423_v31  ;;  %v411_v40 = vsel %vm319_vm1, %v409_v32, %v410_v33 }
  0xbf   : > { %v859_v41 = vpack.i.bf16 %v424_v1, %v422_v39  ;;  %v413_v42 = vsel %vm319_vm1, %v410_v33, %v412_v36  ;;  %v432_v43 = vrot.slane %v404_v24, 3  ;;  %v434_v44 = vrot.slane %v405_v25, 3 }
  0xc0   : > { %803 = vmatprep.mubr.msk.bf16.mxu0 %vm400_vm5, %v458_v38  ;;  %v854_v45 = vpack.i.bf16 %v413_v42, %v411_v40  ;;  %v645_v25 = vrot.slane %v597_v11, %v351_v20  ;;  %v664_v26 = vrot.slane %v597_v11, %v371_v23 }
  0xc1   : > { %860 = vrot.lane.b32.xlu0 %v859_v41, %s945_s10  ;;  %v433_v46 = vsel %vm359_vm3, %v431_v37, %v432_v43  ;;  %v435_v47 = vsel %vm359_vm3, %v432_v43, %v434_v44  ;;  %s948_s10 = smov [#allocation5]  }
  0xc2   : > { %855 = vrot.lane.b32.xlu1 %v854_v45, %s946_s14  ;;  %v864_v48 = vpack.i.bf16 %v435_v47, %v433_v46  ;;  %s883_s14 = sshll.u32 %s948_s10, 4  ;;  %s884_s14 = int_to_ptr.vmem [resolvable:$false] %s883_s14 }
  0xc3   : > { %p886_p0 = scmp.lt.s32.totalorder %s1171_s23, %s884_s14 }
  0xc6   : > { %865 = vrot.lane.b32.xlu1 %v864_v48, %s947_s15  ;;  %s885_s15 = scalar_lea.vmem %s884_s14, 32 }
  0xc7   : > { %p887_p1 = scmp.lt.s32.totalorder %s885_s15, %s879_s6 }
  0xc9   : > { %p888_p2 = por %p887_p1, %p886_p0 }
  0xcb   : > { %p889_p3 = pnand %p888_p2, %p882_p13 }
 0x133   : > { %v861_v49 = vpop.permute.xlu0 %860 }
 0x134   : > { %v856_v50 = vpop.permute.xlu1 %855  ;;  %v863_v53 = vunpack.i.h.bf16 %v861_v49  ;;  %v862_v54 = vunpack.i.l.bf16 %v861_v49 }
 0x135   : > { %v858_v51 = vunpack.i.h.bf16 %v856_v50  ;;  %v857_v52 = vunpack.i.l.bf16 %v856_v50 }
 0x137   : > { %v450_v55 = vsel %vm400_vm5, %v404_v24, %v858_v51  ;;  %v449_v56 = vsel %vm400_vm5, %v403_v22, %v857_v52  ;;  %v601_v24 = vrot.slane %v597_v11, %v1092_v21 }
 0x138   : > { %v866_v57 = vpop.permute.xlu1 %865  ;;  %v452_v60 = vsel %vm451_vm6, %v449_v56, %v862_v54  ;;  %v453_v61 = vsel %vm451_vm6, %v450_v55, %v863_v53 }
 0x139   : > { %v868_v58 = vunpack.i.h.bf16 %v866_v57  ;;  %v867_v59 = vunpack.i.l.bf16 %v866_v57 }
 0x13b   : > { %v455_v62 = vsel %vm454_vm7, %v452_v60, %v867_v59  ;;  %v456_v63 = vsel %vm454_vm7, %v453_v61, %v868_v58 }
 0x13c   : > { %v457_v0 = vpack.c.bf16 %v456_v63, %v455_v62 }
 0x13e   : > { %582 = vmatmul.mubr.bf16.vlgmr.msra.gmra.mrb[0].mxu0 %v457_v0 }
 0x211   : > { %v583_v3 = vpop.f32.mrb[0].mxu0 }
 0x212   : > { %v584_v4 = vadd.f32 %v792_v2, %v583_v3  ;;  %v585_v5 = vpop.f32.mrb[1].mxu0  ;;  %v686_v3 = vld [vmem:[#allocation4] sm:$0x1] }
 0x213   : > { %v586_v6 = vpop.f32.mrb[2].mxu0 }
 0x214   : > { %v590_v7 = vmax.f32 %v584_v4, 0.0  ;;  %v587_v8 = vadd.f32 %v792_v2, %v586_v6  ;;  %v588_v9 = vpop.f32.mrb[3].mxu0  ;;  %v703_v4 = vand.u32 127, %v298_v14 }
 0x216   : > { %592 = vst.msk [vmem:[#allocation3 + $0x2] sm:$0xff] %vm400_vm5, %v590_v7  ;;  %v591_v10 = vmax.f32 %v587_v8, 0.0  ;;  %v708_v6 = vadd.s32 4294967288, %v703_v4 }
 0x218   : > { %593 = vst.msk [vmem:[#allocation3 + $0xa] sm:$0xff] %vm400_vm5, %v591_v10  ;;  %v706_v10 = vsub.s32 %v703_v4, %v1081_v15  ;;  %v711_v11 = vsub.s32 %v708_v6, %v1081_v15 }
 0x21d   : > { %v594_v17 = vld [vmem:[#allocation3] sm:$0xff] }
 0x21e   : > { %v608_v27 = vmul.f32 %v607_v12, %v594_v17  ;;  %v627_v31 = vmul.f32 %v626_v13, %v594_v17  ;;  %v646_v1 = vmul.f32 %v645_v25, %v594_v17  ;;  %v602_v44 = vmul.f32 %v601_v24, %v594_v17 }
 0x21f   : > { %v595_v19 = vld [vmem:[#allocation3 + $0x8] sm:$0xff]  ;;  %v596_v22 = vld [vmem:[#allocation3 + $0x10] sm:$0xf]  ;;  %v665_v45 = vmul.f32 %v664_v26, %v594_v17 }
 0x220   : > { %v609_v28 = vmul.f32 %v607_v12, %v595_v19  ;;  %v610_v29 = vmul.f32 %v607_v12, %v596_v22  ;;  %v628_v30 = vmul.f32 %v626_v13, %v595_v19  ;;  %v629_v16 = vmul.f32 %v626_v13, %v596_v22 }
 0x221   : > { %v647_v32 = vmul.f32 %v645_v25, %v595_v19  ;;  %v648_v33 = vmul.f32 %v645_v25, %v596_v22  ;;  %v666_v18 = vmul.f32 %v664_v26, %v595_v19  ;;  %v667_v37 = vmul.f32 %v664_v26, %v596_v22 }
 0x222   : > { %v615_v34 = vrot.slane %v609_v28, 1  ;;  %v617_v35 = vrot.slane %v610_v29, 1  ;;  %v634_v36 = vrot.slane %v628_v30, 2  ;;  %v603_v38 = vmul.f32 %v601_v24, %v595_v19 }
 0x223   : > { %v636_v39 = vrot.slane %v629_v16, 2  ;;  %v653_v40 = vrot.slane %v647_v32, 3  ;;  %v655_v23 = vrot.slane %v648_v33, 3  ;;  %v614_v41 = vrot.slane %v608_v27, 1 }
 0x224   : > { %v618_v20 = vsel %vm319_vm1, %v615_v34, %v617_v35  ;;  %v672_v43 = vrot.slane %v666_v18, 4  ;;  %v674_v47 = vrot.slane %v667_v37, 4  ;;  %v633_v49 = vrot.slane %v627_v31, 2 }
 0x225   : > { %v622_v42 = vadd.f32 %v618_v20, %v603_v38  ;;  %v637_v46 = vsel %vm339_vm2, %v634_v36, %v636_v39  ;;  %v616_v48 = vsel %vm319_vm1, %v614_v41, %v615_v34  ;;  %v656_v52 = vsel %vm359_vm3, %v653_v40, %v655_v23 }
 0x226   : > { %v621_v51 = vadd.f32 %v616_v48, %v602_v44  ;;  %v635_v53 = vsel %vm339_vm2, %v633_v49, %v634_v36  ;;  %v652_v54 = vrot.slane %v646_v1, 3  ;;  %v675_v57 = vsel %vm379_vm4, %v672_v43, %v674_v47 }
 0x227   : > { %v641_v50 = vadd.f32 %v637_v46, %v622_v42  ;;  %v671_v59 = vrot.slane %v665_v45, 4 }
 0x228   : > { %v640_v56 = vadd.f32 %v635_v53, %v621_v51  ;;  %v654_v58 = vsel %vm359_vm3, %v652_v54, %v653_v40 }
 0x229   : > { %v660_v55 = vadd.f32 %v656_v52, %v641_v50  ;;  %v673_v62 = vsel %vm379_vm4, %v671_v59, %v672_v43 }
 0x22a   : > { %v659_v61 = vadd.f32 %v654_v58, %v640_v56 }
 0x22b   : > { %v679_v60 = vadd.f32 %v675_v57, %v660_v55 }
 0x22c   : > { %v678_v0 = vadd.f32 %v673_v62, %v659_v61 }
 0x22d   : > { %v683_v63 = vsel %vm400_vm5, %v679_v60, 0.0 }
 0x22e   : > { %684 = vadd.xlane.f32.xlu1 %v683_v63  ;;  %v680_v2 = vsel %vm400_vm5, %v678_v0, 0.0 }
 0x22f   : > { %681 = vadd.xlane.f32.xlu0 %v680_v2 }
 0x245   : > { %689 = vperm.xlu0 %852, %v686_v3  }
 0x2bb   : > { %v685_v9 = vpop.xlane.xlu1 %684 }
 0x2bc   : > { %v682_v5 = vpop.xlane.xlu0 %681 }
 0x2c4   : > { %v690_v7 = vpop.permute.xlu0 %689 }
 0x2c5   : > { %v695_v8 = vrot.slane %v690_v7, %v1092_v21 }
 0x2c7   : > { %v696_v12 = vadd.f32 %v695_v8, %v682_v5  ;;  %v697_v13 = vadd.f32 %v695_v8, %v685_v9 }
 0x2c9   : > { %v698_v17 = vmax.f32 %v696_v12, 0.0  ;;  %v699_v19 = vmax.f32 %v697_v13, 0.0 }
 0x2cb   : > { %v707_v14 = vrot.slane %v698_v17, %v706_v10  ;;  %v712_v22 = vrot.slane %v699_v19, %v711_v11 }
 0x2cd   : > { %v714_v15 = vsel %vm713_vm8, %v712_v22, %v707_v14 }
 0x2ce   : > { %717 = vst.msk [vmem:[%s272_s22] sm:$0x1] %vm716_vm9, %v714_v15 }
 0x2cf   : > { %892 = shalt.err (!%p889_p3)
}
 0x2d0   : > { %s893_s16 = scalar_lea.hbm %s1169_s30, 16  ;;  %s897_s19 = scalar_lea.hbm %s1218_s7, 32 }
 0x2d1   : > { %p894_p4 = scmp.ne.s32.totalorder %s1169_s30, %s893_s16  ;;  %p898_p9 = scmp.lt.u32.totalorder %s1169_s30, %s1218_s7 }
 0x2d2   : > { %p899_p10 = scmp.lt.u32.totalorder %s897_s19, %s893_s16  ;;  %p901_p12 = scmp.lt.u32.totalorder %s893_s16, %s1169_s30 }
 0x2d3   : > { %p895_p7 = pnand %p894_p4, %p1030_p5 }
 0x2d4   : > { %p900_p11 = por %p899_p10, %p898_p9 }
 0x2d5   : > { %p896_p8 = pneg %p895_p7 }
 0x2d6   : > { %p902_p13 = por %p901_p12, %p900_p11 }
 0x2d8   : > { %p903_p0 = pnand %p902_p13, %p896_p8 }
 0x2da   : > { %906 = shalt.err (!%p903_p0)
}
 0x2db   : > { %808 = dma.vmem_to_hbm [thread:$0]  (%p1030_p5), %s1171_s23, 16, %s1169_s30, %s719_s9  }
 0x2dc PF: > { %p814_p1 = scmp.ge.s32.totalorder %s941_s29, 2  ;;  %s743_s22 = sand.u32 1, %s929_s26  }
 0x2dd   : > { %s744_s24 = scalar_lea.sflag [#allocation6], %s743_s22 }
 0x2de   : > { %p811_p2 = pnand %p814_p1, %p1034_p6 }
 0x2e0   : > { %924 = dma.done.wait (!%p811_p2), %s744_s24, 16  }
 0x2e1   : > { %926 = vsyncadd (!%p811_p2), %s744_s24, 4294967280  ;;  %p19_p3 = scmp.ge.s32.totalorder %s1017_s8, 4   ;;  %s1221_s26 = smov %s933_s27 }
 0x2e2   : > { %s1222_s27 = smov %s937_s28  ;;  %s1223_s28 = smov %s1028_s11 }
 0x2e3   : > { %s1224_s29 = smov %s1017_s8  ;;  %21 = sbr.rel (!%p19_p3) target bundleno = 6 (0x6), region = 83 }
 0x2ea   :  { %748 = vsyncpa [#allocation6], 1 }
 0x2eb   :  { %750 = vsyncpa [#allocation6 + $0x1], 1 }

</bundles_post_ra>
